<compile_context>
chip_gen: v5e
topology: v5e:2x2
jax: 0.10.0
libtpu: 0.0.40
codegen_flags: <defaults>
</compile_context>

<pallas_src>
import functools

import jax
import jax.numpy as jnp
from jax import lax
from jax.experimental import pallas as pl
from jax.experimental.pallas import tpu as pltpu


def _round_up(x, m):
    return ((x + m - 1) // m) * m


def _dense_crf_kernel(gi_ref, gj_ref, sqc_ref, sqr_ref, si_ref, sj_ref,
                      out_ref, *, nt, tj, exp_bf16):
    """One (batch, i-tile, offset) step of sum_{i,j,c} K(i,j) S_c(i) S_c(j).

    The tile pair is (i, j) with j = (i + offset) % nt (circulant covering of
    the symmetric pairwise space): every unordered tile pair is visited once,
    except the wrap-around pair at offset == nt/2 (even nt), visited from both
    sides and therefore weighted 1 instead of 2.
    """
    kk = pl.program_id(2)

    # -0.5*|f_i - f_j|^2 = (f_i . f_j) - 0.5|f_i|^2 - 0.5|f_j|^2
    # Cross term on the MXU with bf16 operands (f32 accumulation); the |f|^2
    # terms stay in f32 on the VPU so the near-cancellation keeps precision.
    cross = lax.dot_general(gi_ref[...], gj_ref[...],
                            (((0,), (0,)), ((), ())),
                            preferred_element_type=jnp.float32)      # (TI, TJ)
    logk = cross - sqc_ref[...] - sqr_ref[...]      # (TI,1) / (1,TJ) broadcasts
    if exp_bf16:
        kmat = jnp.exp(logk.astype(jnp.bfloat16))   # bf16 EUP path (v6e/v7x)
    else:
        kmat = jnp.exp(logk).astype(jnp.bfloat16)   # f32 EUP (v5e), bf16 for MXU

    # S_i^T @ K : (Kp, TI) x (TI, TJ) -> (Kp, TJ); full contraction depth and
    # lane-dense output (the old K @ S_j form used only 8 MXU columns).
    m = lax.dot_general(si_ref[...].astype(jnp.bfloat16), kmat,
                        (((1,), (0,)), ((), ())),
                        preferred_element_type=jnp.float32)          # (Kp, TJ)
    prod = m * sj_ref[...]                                           # f32

    # Fold lanes 128 at a time with plain vreg adds (no per-step XLU reduce);
    # the final scalar reduce happens once, outside the kernel.
    acc = prod[:, 0:128]
    for c in range(1, tj // 128):
        acc = acc + prod[:, c * 128:(c + 1) * 128]

    # Symmetry weighting: diagonal (offset 0) counted once; wrap-around pair
    # (even nt, offset nt/2) visited from both sides -> 1; otherwise 2.
    factor = jnp.where(jnp.logical_or(kk == 0, 2 * kk == nt), 1.0, 2.0)
    acc = acc * factor

    @pl.when(kk == 0)
    def _init():
        out_ref[...] = acc

    @pl.when(kk > 0)
    def _accumulate():
        out_ref[...] = out_ref[...] + acc


def _default_exp_bf16():
    # v6e/v7x EUP has a bf16 path (~2x exp throughput); v5e does not.
    try:
        kind = jax.devices()[0].device_kind.lower()
    except Exception:
        return True
    return "v5" not in kind


def dense_crf_loss(images, segmentations, *, weight, sigma_rgb, sigma_xy,
                   scale_factor, tile=1024, exp_bf16=None):
    """images: (N, C, H, W) float in [0, 255]; segmentations: (N, K, H, W) softmax."""
    if exp_bf16 is None:
        exp_bf16 = _default_exp_bf16()

    images = images.astype(jnp.float32)
    segmentations = segmentations.astype(jnp.float32)

    n, c_img, h, w = images.shape
    _, k, _, _ = segmentations.shape
    sh, sw = int(h * scale_factor), int(w * scale_factor)

    # F.interpolate defaults: 'nearest' for images, bilinear for soft segs.
    imgs_s = jax.image.resize(images, (n, c_img, sh, sw), method="nearest")
    segs_s = jax.image.resize(segmentations, (n, k, sh, sw), method="bilinear")
    p = sh * sw

    # Bilateral features f = [xy/sigma_xy, rgb/sigma_rgb] in (batch, feature,
    # pixel) layout: pixels on the 128-lane axis, no wrapper transposes.
    yy, xx = jnp.meshgrid(jnp.arange(sh, dtype=jnp.float32),
                          jnp.arange(sw, dtype=jnp.float32), indexing="ij")
    xy = jnp.stack([xx.reshape(-1), yy.reshape(-1)], axis=0) / sigma_xy   # (2,P)
    rgb = imgs_s.reshape(n, c_img, p) / sigma_rgb                          # (N,C,P)
    feat = jnp.concatenate([jnp.broadcast_to(xy[None], (n, 2, p)), rgb], axis=1)
    feat_bf = feat.astype(jnp.bfloat16)          # MXU operands
    # 0.5*|f|^2 in f32 FROM the bf16-rounded features so that
    # cross - sq_i - sq_j cancels exactly for (near-)identical pixels.
    sq = 0.5 * jnp.sum(feat_bf.astype(jnp.float32) ** 2, axis=1, keepdims=True)
    segs = segs_s.reshape(n, k, p)                                          # (N,K,P)

    # Pad: features/classes to sublane multiples of 8, pixels to a lane-dense
    # tile multiple of 128.  Padded pixels have f = 0 (so K = 1 against them),
    # harmless only because their S rows are zero (see note below).
    f_dim = 2 + c_img
    f_pad = _round_up(f_dim, 8)
    k_pad = _round_up(k, 8)
    ti = max(128, (min(int(tile), _round_up(p, 128)) // 128) * 128)
    p_pad = _round_up(p, ti)
    nt = p_pad // ti

    feat_bf = jnp.pad(feat_bf, ((0, 0), (0, f_pad - f_dim), (0, p_pad - p)))
    sq_row = jnp.pad(sq, ((0, 0), (0, 0), (0, p_pad - p)))     # (N, 1, P_pad)
    sq_col = jnp.swapaxes(sq_row, 1, 2)                        # (N, P_pad, 1)
    segs = jnp.pad(segs, ((0, 0), (0, k_pad - k), (0, p_pad - p)))

    # Circulant covering of the symmetric tile-pair space: for row-tile i the
    # innermost axis visits j = (i + offset) % nt, offset = 0 .. n_off-1.
    n_off = nt // 2 + 1 if nt % 2 == 0 else (nt + 1) // 2

    kernel = functools.partial(_dense_crf_kernel, nt=nt, tj=ti,
                               exp_bf16=bool(exp_bf16))
    partials = pl.pallas_call(
        kernel,
        out_shape=jax.ShapeDtypeStruct((n, nt, k_pad, 128), jnp.float32),
        grid_spec=pltpu.PrefetchScalarGridSpec(
            num_scalar_prefetch=0,
            grid=(n, nt, n_off),
            in_specs=[
                pl.BlockSpec((None, f_pad, ti), lambda b, i, o: (b, 0, i)),
                pl.BlockSpec((None, f_pad, ti),
                             lambda b, i, o: (b, 0, (i + o) % nt)),
                pl.BlockSpec((None, ti, 1), lambda b, i, o: (b, i, 0)),
                pl.BlockSpec((None, 1, ti),
                             lambda b, i, o: (b, 0, (i + o) % nt)),
                pl.BlockSpec((None, k_pad, ti), lambda b, i, o: (b, 0, i)),
                pl.BlockSpec((None, k_pad, ti),
                             lambda b, i, o: (b, 0, (i + o) % nt)),
            ],
            out_specs=pl.BlockSpec((None, None, k_pad, 128),
                                   lambda b, i, o: (b, i, 0, 0)),
        ),
        compiler_params=pltpu.CompilerParams(
            dimension_semantics=("parallel", "parallel", "arbitrary"),
            vmem_limit_bytes=48 * 1024 * 1024),
    )(feat_bf, feat_bf, sq_col, sq_row, segs, segs)

    # TODO(synk): reference forward() is NotImplemented; rloss normalizes by
    # batch size only (no pixel-count division) -- kept here.
    return (-float(weight) / float(n)) * jnp.sum(partials)


def _dense_crf_loss_reference(images, segmentations, *, weight, sigma_rgb,
                              sigma_xy, scale_factor):
    """Pure-JAX brute-force reference (same semantics, f32 throughout)."""
    images = images.astype(jnp.float32)
    segmentations = segmentations.astype(jnp.float32)
    n, c_img, h, w = images.shape
    k = segmentations.shape[1]
    sh, sw = int(h * scale_factor), int(w * scale_factor)
    imgs_s = jax.image.resize(images, (n, c_img, sh, sw), method="nearest")
    segs_s = jax.image.resize(segmentations, (n, k, sh, sw), method="bilinear")
    p = sh * sw
    yy, xx = jnp.meshgrid(jnp.arange(sh, dtype=jnp.float32),
                          jnp.arange(sw, dtype=jnp.float32), indexing="ij")
    xy = jnp.stack([xx.reshape(-1), yy.reshape(-1)], axis=-1)
    f = jnp.concatenate(
        [jnp.broadcast_to(xy[None], (n, p, 2)) / sigma_xy,
         imgs_s.reshape(n, c_img, p).transpose(0, 2, 1) / sigma_rgb], axis=-1)
    s = segs_s.reshape(n, k, p).transpose(0, 2, 1)
    d2 = jnp.sum((f[:, :, None, :] - f[:, None, :, :]) ** 2, axis=-1)
    kmat = jnp.exp(-0.5 * d2)
    ss = jnp.einsum("npk,nqk->npq", s, s)
    return weight * (-jnp.sum(kmat * ss) / n)


if __name__ == "__main__":
    # Deterministic "module parameters" (the nn.Module __init__ scalars).
    weight = 1e-7
    sigma_rgb = 40.0
    sigma_xy = 6.0
    scale_factor = 0.5

    key = jax.random.PRNGKey(0)
    k_img, k_seg = jax.random.split(key)

    n, c_img, h, w = 2, 3, 16, 16
    k_classes = 4
    # Smooth images (low-res noise upsampled) so the bilateral kernel has
    # meaningful off-diagonal mass and the pairwise math is exercised.
    base = jax.random.uniform(k_img, (n, c_img, 4, 4), dtype=jnp.float32,
                              minval=0.0, maxval=255.0)
    images = jax.image.resize(base, (n, c_img, h, w), method="bilinear")
    logits = jax.random.normal(k_seg, (n, k_classes, h, w), dtype=jnp.float32)
    segmentations = jax.nn.softmax(logits, axis=1)  # softmaxed logits, NCHW

    loss_fn = jax.jit(functools.partial(
        dense_crf_loss, weight=weight, sigma_rgb=sigma_rgb,
        sigma_xy=sigma_xy, scale_factor=scale_factor))

    loss = loss_fn(images, segmentations)
    jax.block_until_ready(loss)

    ref = _dense_crf_loss_reference(images, segmentations, weight=weight,
                                    sigma_rgb=sigma_rgb, sigma_xy=sigma_xy,
                                    scale_factor=scale_factor)
    assert loss.shape == () and bool(jnp.isfinite(loss))
    assert jnp.allclose(loss, ref, rtol=2e-2, atol=1e-10), (loss, ref)
    print("KERNEL_OK")
</pallas_src>

<mosaic_0001>
module attributes {stable_mosaic.version = 11 : i64} {
  func.func @_dense_crf_kernel(%arg0: i32, %arg1: i32, %arg2: i32, %arg3: memref<1x8x128xbf16, #tpu.memory_space<vmem>>, %arg4: memref<1x8x128xbf16, #tpu.memory_space<vmem>>, %arg5: memref<1x128x1xf32, #tpu.memory_space<vmem>>, %arg6: memref<1x1x128xf32, #tpu.memory_space<vmem>>, %arg7: memref<1x8x128xf32, #tpu.memory_space<vmem>>, %arg8: memref<1x8x128xf32, #tpu.memory_space<vmem>>, %arg9: memref<1x1x8x128xf32, #tpu.memory_space<vmem>>) attributes {dimension_semantics = [#tpu.dimension_semantics<parallel>, #tpu.dimension_semantics<parallel>, #tpu.dimension_semantics<arbitrary>], iteration_bounds = array<i64: 2, 1, 1>, scalar_prefetch = 0 : i64, scratch_operands = 0 : i64, tpu.core_type = #tpu.core_type<tc>, window_params = [{transform_indices = @transform_0, window_bounds = array<i64: 1, 8, 128>}, {transform_indices = @transform_1, window_bounds = array<i64: 1, 8, 128>}, {transform_indices = @transform_2, window_bounds = array<i64: 1, 128, 1>}, {transform_indices = @transform_3, window_bounds = array<i64: 1, 1, 128>}, {transform_indices = @transform_4, window_bounds = array<i64: 1, 8, 128>}, {transform_indices = @transform_5, window_bounds = array<i64: 1, 8, 128>}, {transform_indices = @transform_6, window_bounds = array<i64: 1, 1, 8, 128>}]} {
    %c0 = arith.constant 0 : index
    %c0_0 = arith.constant 0 : index
    %c0_1 = arith.constant 0 : index
    %0 = vector.load %arg3[%c0, %c0_0, %c0_1] : memref<1x8x128xbf16, #tpu.memory_space<vmem>>, vector<1x8x128xbf16>
    %1 = vector.shape_cast %0 : vector<1x8x128xbf16> to vector<8x128xbf16>
    %c0_2 = arith.constant 0 : index
    %c0_3 = arith.constant 0 : index
    %c0_4 = arith.constant 0 : index
    %2 = vector.load %arg4[%c0_2, %c0_3, %c0_4] : memref<1x8x128xbf16, #tpu.memory_space<vmem>>, vector<1x8x128xbf16>
    %3 = vector.shape_cast %2 : vector<1x8x128xbf16> to vector<8x128xbf16>
    %cst = arith.constant dense<0.000000e+00> : vector<128x128xf32>
    %4 = tpu.matmul %1, %3, %cst {dimension_numbers = #tpu.dot_dimension_numbers<[0], [0], [1], [1], [0, 1, 1, 1], [], []>} : vector<8x128xbf16>, vector<8x128xbf16>, vector<128x128xf32> -> vector<128x128xf32>
    %c0_5 = arith.constant 0 : index
    %c0_6 = arith.constant 0 : index
    %c0_7 = arith.constant 0 : index
    %5 = vector.load %arg5[%c0_5, %c0_6, %c0_7] : memref<1x128x1xf32, #tpu.memory_space<vmem>>, vector<1x128x1xf32>
    %6 = vector.shape_cast %5 : vector<1x128x1xf32> to vector<128x1xf32>
    %7 = vector.broadcast %6 : vector<128x1xf32> to vector<128x128xf32>
    %8 = arith.subf %4, %7 : vector<128x128xf32>
    %c0_8 = arith.constant 0 : index
    %c0_9 = arith.constant 0 : index
    %c0_10 = arith.constant 0 : index
    %9 = vector.load %arg6[%c0_8, %c0_9, %c0_10] : memref<1x1x128xf32, #tpu.memory_space<vmem>>, vector<1x1x128xf32>
    %10 = vector.shape_cast %9 : vector<1x1x128xf32> to vector<1x128xf32>
    %11 = vector.broadcast %10 : vector<1x128xf32> to vector<128x128xf32>
    %12 = arith.subf %8, %11 : vector<128x128xf32>
    %13 = arith.truncf %12 : vector<128x128xf32> to vector<128x128xbf16>
    %14 = math.exp %13 : vector<128x128xbf16>
    %c0_11 = arith.constant 0 : index
    %c0_12 = arith.constant 0 : index
    %c0_13 = arith.constant 0 : index
    %15 = vector.load %arg7[%c0_11, %c0_12, %c0_13] : memref<1x8x128xf32, #tpu.memory_space<vmem>>, vector<1x8x128xf32>
    %16 = vector.shape_cast %15 : vector<1x8x128xf32> to vector<8x128xf32>
    %17 = arith.truncf %16 : vector<8x128xf32> to vector<8x128xbf16>
    %cst_14 = arith.constant dense<0.000000e+00> : vector<8x128xf32>
    %18 = tpu.matmul %17, %14, %cst_14 {dimension_numbers = #tpu.dot_dimension_numbers<[1], [0], [0], [1], [0, 0, 1, 1], [], []>} : vector<8x128xbf16>, vector<128x128xbf16>, vector<8x128xf32> -> vector<8x128xf32>
    %c0_15 = arith.constant 0 : index
    %c0_16 = arith.constant 0 : index
    %c0_17 = arith.constant 0 : index
    %19 = vector.load %arg8[%c0_15, %c0_16, %c0_17] : memref<1x8x128xf32, #tpu.memory_space<vmem>>, vector<1x8x128xf32>
    %20 = vector.shape_cast %19 : vector<1x8x128xf32> to vector<8x128xf32>
    %21 = arith.mulf %18, %20 : vector<8x128xf32>
    %c0_i32 = arith.constant 0 : i32
    %22 = arith.cmpi eq, %arg2, %c0_i32 : i32
    %c2_i32 = arith.constant 2 : i32
    %23 = arith.muli %c2_i32, %arg2 : i32
    %c1_i32 = arith.constant 1 : i32
    %24 = arith.cmpi eq, %23, %c1_i32 : i32
    %25 = arith.ori %22, %24 : i1
    %cst_18 = arith.constant 1.000000e+00 : f32
    %cst_19 = arith.constant 2.000000e+00 : f32
    %26 = arith.select %25, %cst_18, %cst_19 : f32
    %27 = vector.broadcast %26 : f32 to vector<8x128xf32>
    %28 = arith.mulf %21, %27 : vector<8x128xf32>
    %c0_i32_20 = arith.constant 0 : i32
    %29 = arith.cmpi eq, %arg2, %c0_i32_20 : i32
    %30 = arith.extui %29 : i1 to i32
    %c0_i32_21 = arith.constant 0 : i32
    %31 = arith.cmpi ne, %30, %c0_i32_21 : i32
    scf.if %31 {
      %c0_24 = arith.constant 0 : index
      %c0_25 = arith.constant 0 : index
      %c0_26 = arith.constant 0 : index
      %c0_27 = arith.constant 0 : index
      %35 = vector.load %arg9[%c0_24, %c0_25, %c0_26, %c0_27] : memref<1x1x8x128xf32, #tpu.memory_space<vmem>>, vector<1x1x8x128xf32>
      %36 = vector.shape_cast %35 : vector<1x1x8x128xf32> to vector<8x128xf32>
      %37 = vector.shape_cast %28 : vector<8x128xf32> to vector<1x1x8x128xf32>
      tpu.vector_store %arg9[%c0_24, %c0_25, %c0_26, %c0_27], %37 {strides = array<i32>} : memref<1x1x8x128xf32, #tpu.memory_space<vmem>>, vector<1x1x8x128xf32>,
    } else {
    }
    %c0_i32_22 = arith.constant 0 : i32
    %32 = arith.cmpi sgt, %arg2, %c0_i32_22 : i32
    %33 = arith.extui %32 : i1 to i32
    %c0_i32_23 = arith.constant 0 : i32
    %34 = arith.cmpi ne, %33, %c0_i32_23 : i32
    scf.if %34 {
      %c0_24 = arith.constant 0 : index
      %c0_25 = arith.constant 0 : index
      %c0_26 = arith.constant 0 : index
      %c0_27 = arith.constant 0 : index
      %35 = vector.load %arg9[%c0_24, %c0_25, %c0_26, %c0_27] : memref<1x1x8x128xf32, #tpu.memory_space<vmem>>, vector<1x1x8x128xf32>
      %36 = vector.shape_cast %35 : vector<1x1x8x128xf32> to vector<8x128xf32>
      %37 = arith.addf %36, %28 : vector<8x128xf32>
      %c0_28 = arith.constant 0 : index
      %c0_29 = arith.constant 0 : index
      %c0_30 = arith.constant 0 : index
      %c0_31 = arith.constant 0 : index
      %38 = vector.load %arg9[%c0_28, %c0_29, %c0_30, %c0_31] : memref<1x1x8x128xf32, #tpu.memory_space<vmem>>, vector<1x1x8x128xf32>
      %39 = vector.shape_cast %38 : vector<1x1x8x128xf32> to vector<8x128xf32>
      %40 = vector.shape_cast %37 : vector<8x128xf32> to vector<1x1x8x128xf32>
      tpu.vector_store %arg9[%c0_28, %c0_29, %c0_30, %c0_31], %40 {strides = array<i32>} : memref<1x1x8x128xf32, #tpu.memory_space<vmem>>, vector<1x1x8x128xf32>,
    } else {
    }
    return
  }
  func.func @transform_0(%arg0: i32, %arg1: i32, %arg2: i32) -> (i32, i32, i32) {
    %c0_i32 = arith.constant 0 : i32
    %c0_i32_0 = arith.constant 0 : i32
    return %arg0, %c0_i32, %arg1 : i32, i32, i32
  }
  func.func @transform_1(%arg0: i32, %arg1: i32, %arg2: i32) -> (i32, i32, i32) {
    %0 = arith.addi %arg1, %arg2 : i32
    %c1_i32 = arith.constant 1 : i32
    %c0_i32 = arith.constant 0 : i32
    %1 = arith.cmpi eq, %c1_i32, %c0_i32 : i32
    %c1_i32_0 = arith.constant 1 : i32
    %2 = arith.select %1, %c1_i32_0, %c1_i32 : i32
    %3 = arith.remsi %0, %2 : i32
    %c0_i32_1 = arith.constant 0 : i32
    %4 = arith.cmpi ne, %3, %c0_i32_1 : i32
    %c0_i32_2 = arith.constant 0 : i32
    %5 = arith.cmpi slt, %3, %c0_i32_2 : i32
    %c0_i32_3 = arith.constant 0 : i32
    %6 = arith.cmpi slt, %2, %c0_i32_3 : i32
    %7 = arith.xori %5, %6 : i1
    %8 = arith.andi %7, %4 : i1
    %9 = arith.addi %3, %2 : i32
    %10 = arith.select %8, %9, %3 : i32
    %c0_i32_4 = arith.constant 0 : i32
    %c0_i32_5 = arith.constant 0 : i32
    return %arg0, %c0_i32_4, %10 : i32, i32, i32
  }
  func.func @transform_2(%arg0: i32, %arg1: i32, %arg2: i32) -> (i32, i32, i32) {
    %c0_i32 = arith.constant 0 : i32
    %c0_i32_0 = arith.constant 0 : i32
    return %arg0, %arg1, %c0_i32 : i32, i32, i32
  }
  func.func @transform_3(%arg0: i32, %arg1: i32, %arg2: i32) -> (i32, i32, i32) {
    %0 = arith.addi %arg1, %arg2 : i32
    %c1_i32 = arith.constant 1 : i32
    %c0_i32 = arith.constant 0 : i32
    %1 = arith.cmpi eq, %c1_i32, %c0_i32 : i32
    %c1_i32_0 = arith.constant 1 : i32
    %2 = arith.select %1, %c1_i32_0, %c1_i32 : i32
    %3 = arith.remsi %0, %2 : i32
    %c0_i32_1 = arith.constant 0 : i32
    %4 = arith.cmpi ne, %3, %c0_i32_1 : i32
    %c0_i32_2 = arith.constant 0 : i32
    %5 = arith.cmpi slt, %3, %c0_i32_2 : i32
    %c0_i32_3 = arith.constant 0 : i32
    %6 = arith.cmpi slt, %2, %c0_i32_3 : i32
    %7 = arith.xori %5, %6 : i1
    %8 = arith.andi %7, %4 : i1
    %9 = arith.addi %3, %2 : i32
    %10 = arith.select %8, %9, %3 : i32
    %c0_i32_4 = arith.constant 0 : i32
    %c0_i32_5 = arith.constant 0 : i32
    return %arg0, %c0_i32_4, %10 : i32, i32, i32
  }
  func.func @transform_4(%arg0: i32, %arg1: i32, %arg2: i32) -> (i32, i32, i32) {
    %c0_i32 = arith.constant 0 : i32
    %c0_i32_0 = arith.constant 0 : i32
    return %arg0, %c0_i32, %arg1 : i32, i32, i32
  }
  func.func @transform_5(%arg0: i32, %arg1: i32, %arg2: i32) -> (i32, i32, i32) {
    %0 = arith.addi %arg1, %arg2 : i32
    %c1_i32 = arith.constant 1 : i32
    %c0_i32 = arith.constant 0 : i32
    %1 = arith.cmpi eq, %c1_i32, %c0_i32 : i32
    %c1_i32_0 = arith.constant 1 : i32
    %2 = arith.select %1, %c1_i32_0, %c1_i32 : i32
    %3 = arith.remsi %0, %2 : i32
    %c0_i32_1 = arith.constant 0 : i32
    %4 = arith.cmpi ne, %3, %c0_i32_1 : i32
    %c0_i32_2 = arith.constant 0 : i32
    %5 = arith.cmpi slt, %3, %c0_i32_2 : i32
    %c0_i32_3 = arith.constant 0 : i32
    %6 = arith.cmpi slt, %2, %c0_i32_3 : i32
    %7 = arith.xori %5, %6 : i1
    %8 = arith.andi %7, %4 : i1
    %9 = arith.addi %3, %2 : i32
    %10 = arith.select %8, %9, %3 : i32
    %c0_i32_4 = arith.constant 0 : i32
    %c0_i32_5 = arith.constant 0 : i32
    return %arg0, %c0_i32_4, %10 : i32, i32, i32
  }
  func.func @transform_6(%arg0: i32, %arg1: i32, %arg2: i32) -> (i32, i32, i32, i32) {
    %c0_i32 = arith.constant 0 : i32
    %c0_i32_0 = arith.constant 0 : i32
    %c0_i32_1 = arith.constant 0 : i32
    return %arg0, %arg1, %c0_i32, %c0_i32_0 : i32, i32, i32, i32
  }
}

</mosaic_0001>

<bundles_post_ra>
// kernel: dense_crf_loss.1
= control target key start
LH: loop header
LB: loop body
LE: loop exit
PB: predicated region body
PF: predicated region fallthrough
CT: control target
= control target key end

     0   :  { %s1014_s21 = smov 0   ;;  %s1016_s22 = smov 0   ;;  %s1129_s0 = inlined_call_operand.vmem [shape: bf16[2,8,128], index: 0, kind: input, shape index: {}, may-alias: {0,1}]   ;;  %s1130_s1 = inlined_call_operand.vmem [shape: bf16[2,8,128], index: 1, kind: input, shape index: {}, may-alias: {0,1}]   ;;  %s1131_s2 = inlined_call_operand.vmem [shape: f32[2,128,1], index: 2, kind: input, shape index: {}]   ;;  %s1132_s3 = inlined_call_operand.vmem [shape: f32[2,1,128], index: 3, kind: input, shape index: {}]   ;;  %s1133_s4 = inlined_call_operand.vmem [shape: f32[2,8,128], index: 4, kind: input, shape index: {}, may-alias: {4,5}]   ;;  %s1134_s5 = inlined_call_operand.vmem [shape: f32[2,8,128], index: 5, kind: input, shape index: {}, may-alias: {4,5}]   ;;  %s1135_s6 = inlined_call_operand.vmem [shape: f32[2,1,8,128], index: 6, kind: output, shape index: {}]  }
   0x1   :  { %s1018_s23 = smov 0  }
   0x2 LB: > { %s35_s24 = sadd.s32 1, %s972_s22  ;;  %p872_p0 = scmp.ge.s32.totalorder %s976_s23, 1  ;;  %s976_s23 = sphi %s1018_s23, %s16_s23   ;;  %s972_s22 = sphi %s1016_s22, %s1137_s22   ;;  %s968_s21 = sphi %s1014_s21, %s1136_s21  }
   0x3   : > { %p37_p1 = scmp.ge.s32.totalorder %s35_s24, 2  ;;  %p294_p2 = scmp.lt.s32.totalorder %s976_s23, 3 }
   0x5   : > { %s1139_s24 = smov (%p37_p1, %s35_s24), 0  ;;  %p295_p3 = pnand %p872_p0, %p294_p2 }
   0x6   : > { %p355_p4 = scmp.lt.s32.totalorder (!%p295_p3), %s968_s21, 1 }
   0x7   : > { %298 = sbr.rel (%p295_p3) target bundleno = 626 (0x272), region = 44 }
   0xc   : > { %v978_v0 = vmov 0   ;;  %s1141_s21 = smov (!%p355_p4, %s968_s21), 1  ;;  %vm441_vm0 = vcmask 1043456   ;;  %vm416_vm1 = vcmask 64512  }
   0xd   : > { %919 = vset.pattern.permute.xlu1 %v978_v0  ;;  %920 = vset.pattern.permute.xlu2 %v978_v0  ;;  %s873_s25 = sshll.u32 %s1141_s21, 2  ;;  %s890_s26 = sshll.u32 %s1141_s21, 7 }
   0xe   : > { %s361_s29 = scalar_lea.vmem %s1129_s0, %s873_s25  ;;  %s365_s8 = scalar_lea.vmem %s1130_s1, %s873_s25 }
   0xf   : > { %s1045_s11 = scalar_lea.vmem %s1131_s2, %s890_s26  ;;  %s378_s14 = scalar_lea.vmem %s1132_s3, %s1141_s21  ;;  %v398_v1 = vld [vmem:[%s361_s29] sm:$0xf] }
  0x10   : > { %v399_v2 = vld [vmem:[%s365_s8] sm:$0xf]  ;;  %400 = vxpose.xlu0.c.b16.start.end [1/1] (short) %v398_v1, 128  ;;  %v509_v3 = vld [vmem:[%s1045_s11 + $0x78] sm:$0xff]  ;;  %v503_v7 = vld [vmem:[%s1045_s11 + $0x48] sm:$0xff]  ;;  %s877_s17 = sshll.u32 %s1141_s21, 3 }
  0x11   : > { %v443_v4 = vsel %vm441_vm0, %v399_v2, 0  ;;  %587 = vperm.xlu1 %919, %v509_v3   ;;  %v506_v5 = vld [vmem:[%s1045_s11 + $0x60] sm:$0xff]  ;;  %v505_v6 = vld [vmem:[%s1045_s11 + $0x58] sm:$0xff]  ;;  %v507_v8 = vld [vmem:[%s1045_s11 + $0x68] sm:$0xff]  ;;  %s385_s20 = scalar_lea.vmem %s1133_s4, %s877_s17  ;;  %s389_s27 = scalar_lea.vmem %s1134_s5, %s877_s17 }
  0x12   : > { %452 = vmatpush.bf16.msra.mxu0 %v443_v4  ;;  %891 = vmatpush.bf16.msra.mxu2 %v443_v4  ;;  %v501_v9 = vld [vmem:[%s1045_s11 + $0x38] sm:$0xff]  ;;  %v504_v11 = vld [vmem:[%s1045_s11 + $0x50] sm:$0xff]  ;;  %v499_v12 = vld [vmem:[%s1045_s11 + $0x28] sm:$0xff]  ;;  %s396_s29 = scalar_lea.vmem %s1135_s6, %s877_s17 }
  0x13   : > { %892 = vmatpush.bf16.msra.mxu3 %v443_v4  ;;  %577 = vperm.xlu2 %920, %v507_v8   ;;  %v502_v14 = vld [vmem:[%s1045_s11 + $0x40] sm:$0xff]  ;;  %v497_v15 = vld [vmem:[%s1045_s11 + $0x18] sm:$0xff]  ;;  %v500_v16 = vld [vmem:[%s1045_s11 + $0x30] sm:$0xff] }
  0x14   : > { %v495_v17 = vld [vmem:[%s1045_s11 + $0x8] sm:$0xff]  ;;  %v498_v19 = vld [vmem:[%s1045_s11 + $0x20] sm:$0xff]  ;;  %v496_v20 = vld [vmem:[%s1045_s11 + $0x10] sm:$0xff] }
  0x15   : > { %v494_v22 = vld [vmem:[%s1045_s11] sm:$0xff]  ;;  %v508_v25 = vld [vmem:[%s1045_s11 + $0x70] sm:$0xff] }
  0x16   : > { %v1088_v53 = vld [vmem:[%s378_s14] ss:$0 sm:$0xff] }
  0x19   : > { %572 = vperm.xlu1 %919, %v506_v5  }
  0x1b   : > { %562 = vperm.xlu2 %920, %v504_v11  }
  0x21   : > { %567 = vperm.xlu1 %919, %v505_v6  }
  0x23   : > { %552 = vperm.xlu2 %920, %v502_v14  }
  0x29   : > { %557 = vperm.xlu1 %919, %v503_v7  }
  0x2b   : > { %542 = vperm.xlu2 %920, %v500_v16  }
  0x31   : > { %547 = vperm.xlu1 %919, %v501_v9  }
  0x33   : > { %532 = vperm.xlu2 %920, %v498_v19  }
  0x39   : > { %537 = vperm.xlu1 %919, %v499_v12  }
  0x3b   : > { %522 = vperm.xlu2 %920, %v496_v20  }
  0x41   : > { %527 = vperm.xlu1 %919, %v497_v15  }
  0x43   : > { %512 = vperm.xlu2 %920, %v494_v22  }
  0x49   : > { %517 = vperm.xlu1 %919, %v495_v17  }
  0x6d   : > { %v578_v30 = vpop.permute.xlu2 %577 }
  0x75   : > { %v563_v35 = vpop.permute.xlu2 %562 }
  0x77   : > { %918 = vset.pattern.permute.xlu0 %v978_v0 }
  0x7d   : > { %v553_v39 = vpop.permute.xlu2 %552 }
  0x83   : > { %v588_v28 = vpop.permute.xlu1 %587 }
  0x85   : > { %v543_v44 = vpop.permute.xlu2 %542 }
  0x8b   : > { %v573_v31 = vpop.permute.xlu1 %572 }
  0x8d   : > { %v533_v50 = vpop.permute.xlu2 %532 }
  0x93   : > { %v568_v34 = vpop.permute.xlu1 %567 }
  0x95   : > { %v523_v6 = vpop.permute.xlu2 %522 }
  0x9b   : > { %v558_v38 = vpop.permute.xlu1 %557 }
  0xa3   : > { %v548_v43 = vpop.permute.xlu1 %547 }
  0xab   : > { %v538_v49 = vpop.permute.xlu1 %537 }
  0xb3   : > { %v528_v5 = vpop.permute.xlu1 %527 }
  0xbc   : > { %v408_v10 = vpop.trf.xlu0 }
  0xbd   : > { %880 = vmatmul.msk.bf16.vlgmr.msra.gmra.mxu0 %vm416_vm1, %v408_v10 }
  0xcc   : > { %v409_v13 = vpop.trf.xlu0 }
  0xcd   : > { %881 = vmatmul.msk.bf16.gmra.mxu0 %vm416_vm1, %v409_v13 }
  0xdc   : > { %v410_v18 = vpop.trf.xlu0 }
  0xdd   : > { %882 = vmatmul.msk.bf16.gmra.mxu0 %vm416_vm1, %v410_v18 }
  0xec   : > { %v411_v21 = vpop.trf.xlu0 }
  0xed   : > { %883 = vmatmul.msk.bf16.vlgmr.msra.gmra.mxu2 %vm416_vm1, %v411_v21 }
  0xee   : > { %582 = vperm.xlu0 %918, %v508_v25  }
  0xfc   : > { %v412_v23 = vpop.trf.xlu0 }
  0xfd   : > { %884 = vmatmul.msk.bf16.gmra.mxu2 %vm416_vm1, %v412_v23 }
 0x10c   : > { %v413_v24 = vpop.trf.xlu0 }
 0x10d   : > { %885 = vmatmul.msk.bf16.gmra.mxu2 %vm416_vm1, %v413_v24 }
 0x11c   : > { %v414_v26 = vpop.trf.xlu0 }
 0x11d   : > { %886 = vmatmul.msk.bf16.vlgmr.msra.gmra.mxu3 %vm416_vm1, %v414_v26 }
 0x12c   : > { %v415_v27 = vpop.trf.xlu0 }
 0x12d   : > { %887 = vmatmul.msk.bf16.gmra.mxu3 %vm416_vm1, %v415_v27 }
 0x13a   : > { %v1075_v33 = vpop.f32.mrf.mxu0 }
 0x142   : > { %v1077_v37 = vpop.f32.mrf.mxu0 }
 0x14a   : > { %v1079_v41 = vpop.f32.mrf.mxu0 }
 0x152   : > { %v1081_v47 = vpop.f32.mrf.mxu0 }
 0x15a   : > { %v464_v54 = vpop.f32.mrf.mxu0 }
 0x15b   : > { %v594_v18 = vsub.f32 %v464_v54, %v533_v50 }
 0x160   : > { %v583_v56 = vpop.permute.xlu0 %582 }
 0x162   : > { %v466_v13 = vpop.f32.mrf.mxu0 }
 0x163   : > { %v595_v23 = vsub.f32 %v466_v13, %v538_v49 }
 0x170   : > { %v469_v29 = vpop.f32.mrf.mxu2 }
 0x171   : > { %v596_v9 = vsub.f32 %v469_v29, %v543_v44 }
 0x173   : > { %v616_v21 = vsub.f32 %v596_v9, %v1088_v53 }
 0x178   : > { %v471_v32 = vpop.f32.mrf.mxu2 }
 0x179   : > { %v597_v10 = vsub.f32 %v471_v32, %v548_v43  ;;  %v593_v32 = vsub.f32 %v1081_v47, %v528_v5 }
 0x17b   : > { %v617_v22 = vsub.f32 %v597_v10, %v1088_v53  ;;  %v613_v47 = vsub.f32 %v593_v32, %v1088_v53 }
 0x180   : > { %v474_v36 = vpop.f32.mrf.mxu2 }
 0x181   : > { %v598_v62 = vsub.f32 %v474_v36, %v553_v39  ;;  %v518_v36 = vpop.permute.xlu1 %517  ;;  %v629_v39 = vpack.c.bf16 %v617_v22, %v616_v21 }
 0x183   : > { %v618_v11 = vsub.f32 %v598_v62, %v1088_v53  ;;  %v640_v49 = vunpack.c.l.bf16 %v629_v39  ;;  %v641_v54 = vunpack.c.h.bf16 %v629_v39 }
 0x185   : > { %v664_v62 = vmul.f32 1.442695, %v641_v54 }
 0x188   : > { %v476_v40 = vpop.f32.mrf.mxu2 }
 0x189   : > { %v599_v63 = vsub.f32 %v476_v40, %v558_v38  ;;  %v513_v38 = vpop.permute.xlu2 %512 }
 0x18b   : > { %v619_v12 = vsub.f32 %v599_v63, %v1088_v53 }
 0x18d   : > { %v630_v24 = vpack.c.bf16 %v619_v12, %v618_v11 }
 0x18f   : > { %v642_v40 = vunpack.c.l.bf16 %v630_v24  ;;  %v643_v43 = vunpack.c.h.bf16 %v630_v24 }
 0x190   : > { %v479_v45 = vpop.f32.mrf.mxu2 }
 0x191   : > { %v600_v57 = vsub.f32 %v479_v45, %v563_v35  ;;  %v615_v35 = vsub.f32 %v595_v23, %v1088_v53 }
 0x193   : > { %v620_v1 = vsub.f32 %v600_v57, %v1088_v53 }
 0x198   : > { %v481_v52 = vpop.f32.mrf.mxu2 }
 0x199   : > { %v601_v58 = vsub.f32 %v481_v52, %v568_v34  ;;  %v614_v34 = vsub.f32 %v594_v18, %v1088_v53 }
 0x19b   : > { %v621_v2 = vsub.f32 %v601_v58, %v1088_v53  ;;  %v628_v50 = vpack.c.bf16 %v615_v35, %v614_v34 }
 0x19d   : > { %v631_v14 = vpack.c.bf16 %v621_v2, %v620_v1  ;;  %v639_v63 = vunpack.c.h.bf16 %v628_v50 }
 0x19f   : > { %v644_v25 = vunpack.c.l.bf16 %v631_v14  ;;  %v645_v29 = vunpack.c.h.bf16 %v631_v14 }
 0x1a0   : > { %v484_v42 = vpop.f32.mrf.mxu3 }
 0x1a1   : > { %v602_v55 = vsub.f32 %v484_v42, %v573_v31  ;;  %v592_v31 = vsub.f32 %v1079_v41, %v523_v6  ;;  %v670_v42 = vmul.f32 1.442695, %v644_v25  ;;  %v672_v44 = vmul.f32 1.442695, %v645_v29 }
 0x1a2   : > { %v591_v41 = vsub.f32 %v1077_v37, %v518_v36 }
 0x1a3   : > { %v622_v60 = vsub.f32 %v602_v55, %v1088_v53  ;;  %v612_v45 = vsub.f32 %v592_v31, %v1088_v53  ;;  %v668_v55 = vmul.f32 1.442695, %v643_v43  ;;  %v705_v31 = vld [vmem:[%s389_s27] sm:$0xff] }
 0x1a8   : > { %v486_v46 = vpop.f32.mrf.mxu3 }
 0x1a9   : > { %v603_v51 = vsub.f32 %v486_v46, %v578_v30  ;;  %v590_v46 = vsub.f32 %v1075_v33, %v513_v38  ;;  %v662_v33 = vmul.f32 1.442695, %v640_v49 }
 0x1ab   : > { %v623_v59 = vsub.f32 %v603_v51, %v1088_v53  ;;  %v666_v51 = vmul.f32 1.442695, %v642_v40  ;;  %v610_v37 = vsub.f32 %v590_v46, %v1088_v53 }
 0x1ad   : > { %v632_v3 = vpack.c.bf16 %v623_v59, %v622_v60  ;;  %v611_v59 = vsub.f32 %v591_v41, %v1088_v53  ;;  %v627_v60 = vpack.c.bf16 %v613_v47, %v612_v45 }
 0x1af   : > { %v646_v15 = vunpack.c.l.bf16 %v632_v3  ;;  %v647_v17 = vunpack.c.h.bf16 %v632_v3  ;;  %v626_v3 = vpack.c.bf16 %v611_v59, %v610_v37  ;;  %v637_v6 = vunpack.c.h.bf16 %v627_v60 }
 0x1b0   : > { %v489_v48 = vpop.f32.mrf.mxu3 }
 0x1b1   : > { %v604_v61 = vsub.f32 %v489_v48, %v583_v56  ;;  %v674_v26 = vmul.f32 1.442695, %v646_v15  ;;  %v676_v30 = vmul.f32 1.442695, %v647_v17  ;;  %v634_v10 = vunpack.c.l.bf16 %v626_v3 }
 0x1b2   : > { %v635_v12 = vunpack.c.h.bf16 %v626_v3  ;;  %v656_v13 = vmul.f32 1.442695, %v637_v6 }
 0x1b3   : > { %v624_v7 = vsub.f32 %v604_v61, %v1088_v53  ;;  %v638_v61 = vunpack.c.l.bf16 %v628_v50  ;;  %v650_v17 = vmul.f32 1.442695, %v634_v10 }
 0x1b4   : > { %v652_v18 = vmul.f32 1.442695, %v635_v12 }
 0x1b5   : > { %v658_v5 = vmul.f32 1.442695, %v638_v61 }
 0x1b8   : > { %v491_v0 = vpop.f32.mrf.mxu3 }
 0x1b9   : > { %v605_v4 = vsub.f32 %v491_v0, %v588_v28 }
 0x1bb   : > { %v625_v8 = vsub.f32 %v605_v4, %v1088_v53  ;;  %v636_v4 = vunpack.c.l.bf16 %v627_v60 }
 0x1bd   : > { %v633_v16 = vpack.c.bf16 %v625_v8, %v624_v7  ;;  %v660_v7 = vmul.f32 1.442695, %v639_v63  ;;  %v654_v11 = vmul.f32 1.442695, %v636_v4 }
 0x1bf   : > { %v648_v19 = vunpack.c.l.bf16 %v633_v16  ;;  %v649_v20 = vunpack.c.h.bf16 %v633_v16 }
 0x1c1   : > { %v678_v27 = vmul.f32 1.442695, %v648_v19  ;;  %v680_v28 = vmul.f32 1.442695, %v649_v20 }
 0x1c3   : > { %922 = vpow2.f32 %v678_v27 }
 0x1c4   : > { %924 = vpow2.f32 %v680_v28  ;;  %v690_v28 = vld [vmem:[%s385_s20] sm:$0xff] }
 0x1c5   : > { %926 = vpow2.f32 %v674_v26 }
 0x1c6   : > { %928 = vpow2.f32 %v676_v30  ;;  %v691_v30 = vpack.c.bf16 %v690_v28, %v690_v28 }
 0x1c7   : > { %930 = vpow2.f32 %v670_v42 }
 0x1c8   : > { %932 = vpow2.f32 %v672_v44 }
 0x1c9   : > { %v923_v48 = vpop.eup %922  ;;  %934 = vpow2.f32 %v666_v51 }
 0x1ca   : > { %v925_v52 = vpop.eup %924  ;;  %936 = vpow2.f32 %v668_v55 }
 0x1cb   : > { %v927_v56 = vpop.eup %926  ;;  %v689_v57 = vpack.c.bf16 %v925_v52, %v923_v48  ;;  %938 = vpow2.f32 %v662_v33 }
 0x1cc   : > { %v929_v58 = vpop.eup %928  ;;  %940 = vpow2.f32 %v664_v62 }
 0x1cd   : > { %692 = vmatpush.bf16.msra.mxu1 %v689_v57  ;;  %v931_v0 = vpop.eup %930  ;;  %v688_v1 = vpack.c.bf16 %v929_v58, %v927_v56  ;;  %942 = vpow2.f32 %v658_v5 }
 0x1ce   : > { %v933_v2 = vpop.eup %932  ;;  %944 = vpow2.f32 %v660_v7 }
 0x1cf   : > { %v935_v53 = vpop.eup %934  ;;  %v687_v8 = vpack.c.bf16 %v933_v2, %v931_v0  ;;  %946 = vpow2.f32 %v654_v11 }
 0x1d0   : > { %v937_v9 = vpop.eup %936  ;;  %948 = vpow2.f32 %v656_v13 }
 0x1d1   : > { %693 = vmatpush.bf16.msra.mxu1 %v688_v1  ;;  %v939_v14 = vpop.eup %938  ;;  %v686_v15 = vpack.c.bf16 %v937_v9, %v935_v53  ;;  %950 = vpow2.f32 %v650_v17 }
 0x1d2   : > { %v941_v16 = vpop.eup %940  ;;  %952 = vpow2.f32 %v652_v18 }
 0x1d3   : > { %v943_v19 = vpop.eup %942  ;;  %v685_v20 = vpack.c.bf16 %v941_v16, %v939_v14 }
 0x1d4   : > { %v945_v21 = vpop.eup %944 }
 0x1d5   : > { %694 = vmatpush.bf16.msra.mxu1 %v687_v8  ;;  %v947_v22 = vpop.eup %946  ;;  %v684_v23 = vpack.c.bf16 %v945_v21, %v943_v19 }
 0x1d6   : > { %v949_v24 = vpop.eup %948 }
 0x1d7   : > { %v951_v25 = vpop.eup %950  ;;  %v683_v26 = vpack.c.bf16 %v949_v24, %v947_v22 }
 0x1d8   : > { %v953_v27 = vpop.eup %952 }
 0x1d9   : > { %695 = vmatpush.bf16.msra.mxu1 %v686_v15  ;;  %v682_v29 = vpack.c.bf16 %v953_v27, %v951_v25 }
 0x1dd   : > { %696 = vmatpush.bf16.msra.mxu1 %v685_v20 }
 0x1e1   : > { %697 = vmatpush.bf16.msra.mxu1 %v684_v23 }
 0x1e5   : > { %698 = vmatpush.bf16.msra.mxu1 %v683_v26 }
 0x1e9   : > { %699 = vmatpush.bf16.msra.mxu1 %v682_v29 }
 0x1ec   : > { %700 = vmatmul.bf16.vlgmr.msra.gmra.mxu1 %v691_v30 }
 0x269   : > { %v701_v32 = vpop.f32.mrf.mxu1 }
 0x26a   : > { %v706_v34 = vmul.f32 %v705_v31, %v701_v32 }
 0x26c   : > { %717 = vst [vmem:[%s396_s29] sm:$0xff] %v706_v34 }
 0x271   : > { %v703_v35 = vpop.f32.mrf.mxu1 }
 0x272 PF: > { %s16_s23 = sadd.s32 1, %s976_s23   ;;  %s1136_s21 = smov %s972_s22 }
 0x273   : > { %p13_p5 = scmp.ge.s32.totalorder %s16_s23, 4   ;;  %s1137_s22 = smov %s1139_s24 }
 0x275   :  { %15 = sbr.rel (!%p13_p5) target bundleno = 2 (0x2), region = 97 }

</bundles_post_ra>
